<compile_context>
chip_gen: v6e
topology: v6e:2x2x1
jax: 0.10.0
libtpu: 0.0.40
codegen_flags: <defaults>
</compile_context>

<pallas_src>
import jax
import jax.numpy as jnp
from jax import lax
from jax.experimental import pallas as pl
from jax.experimental.pallas import tpu as pltpu


def _round_up(x, m):
    return (x + m - 1) // m * m


def _cdiv(a, b):
    return (a + b - 1) // b


def _choose_tile_t(T, cin, fb, cout, budget_bytes=8 << 20):
    """Pick a time-tile so (double-buffered blocks + f32 intermediates) stay
    well inside the default scoped VMEM on every generation."""
    fbp = fb + 2
    # rough bytes per padded time step:
    #   bf16 input block x2 buffers + in-kernel copy  ~ 6*cin*fbp
    #   f32 output block x2 buffers + acc/tap slices  ~ 16*cout*fb
    per_t = 6 * cin * fbp + 16 * cout * fb + 64
    tile = min(T, 512, max(8, budget_bytes // per_t))
    return max(1, int(tile))


def _make_band_kernel(tp, mout_p):
    """Kernel for one (batch, time-tile) grid point of one frequency band.

    tp      : padded time width of the tile (tile_t + 2)
    mout_p  : lane-padded flattened output size (>= Fb * tp, multiple of 128)
    """

    def kernel(x_ref, w_ref, b_ref, o_ref):
        # x_ref: (1, 1, Cin, Mp_p)    bf16  padded activations, (f,t) flattened
        # w_ref: (9, Cout, Cin)       bf16  per-tap flipped ConvTranspose weight
        # b_ref: (Cout, 1)            f32
        # o_ref: (1, 1, Cout, Mout_p) f32
        x = x_ref[0, 0]                                   # (Cin, Mp_p)
        cout = o_ref.shape[2]
        acc = jnp.zeros((cout, mout_p), jnp.float32)
        for kh in range(3):                               # static unroll: 9 taps
            for kw in range(3):
                tap = kh * 3 + kw
                off = kh * tp + kw
                m = jnp.dot(w_ref[tap], x,
                            preferred_element_type=jnp.float32)  # (Cout, Mp_p)
                acc = acc + m[:, off:off + mout_p]
        o_ref[0, 0] = acc + b_ref[...]

    return kernel


def _band_deconv_pallas(x_flat, w9, bias_col, tp, mout_p):
    B, NT, cin, mp_p = x_flat.shape
    cout = w9.shape[1]
    kernel = _make_band_kernel(tp, mout_p)
    return pl.pallas_call(
        kernel,
        out_shape=jax.ShapeDtypeStruct((B, NT, cout, mout_p), jnp.float32),
        grid_spec=pltpu.PrefetchScalarGridSpec(
            num_scalar_prefetch=0,
            grid=(B, NT),
            in_specs=[
                pl.BlockSpec((1, 1, cin, mp_p), lambda b, j: (b, j, 0, 0)),
                pl.BlockSpec((9, cout, cin), lambda b, j: (0, 0, 0)),
                pl.BlockSpec((cout, 1), lambda b, j: (0, 0)),
            ],
            out_specs=pl.BlockSpec((1, 1, cout, mout_p),
                                   lambda b, j: (b, j, 0, 0)),
        ),
        compiler_params=pltpu.CompilerParams(
            dimension_semantics=("parallel", "parallel")),
    )(x_flat, w9, bias_col)


class SplitBandDeconvPallas:
    """JAX/Pallas reimplementation of WHYV2 SplitBandDeconv (forward only)."""

    def __init__(self, key, emb_dim=48, input_n_freqs=65,
                 kernel_size=(3, 3), padding=(1, 1), split_points=None):
        if split_points is None:
            split_points = {40: 1, 60: 2, 64: 5, 65: 29}
        assert input_n_freqs == max(split_points.keys())
        assert kernel_size == (3, 3) and padding == (1, 1)
        self.emb_dim = emb_dim
        self.split_points = split_points
        pts = sorted(split_points.keys())
        self.bands = []
        for idx, p in enumerate(pts):
            start = 0 if idx == 0 else pts[idx - 1]
            n = split_points[p]
            cout = 2 * n
            key, kw_, kb_ = jax.random.split(key, 3)
            # torch ConvTranspose2d weight layout: (Cin, Cout, kH, kW)
            w_pt = 0.1 * jax.random.normal(kw_, (emb_dim, cout, 3, 3),
                                           jnp.float32)
            b = 0.1 * jax.random.normal(kb_, (cout,), jnp.float32)
            # ConvTranspose2d(stride=1, pad=1, k=3) == correlation with the
            # spatially flipped kernel, pad (k-1-pad)=1:
            #   w9[kh*3+kw, co, ci] = w_pt[ci, co, 2-kh, 2-kw]
            w9 = jnp.transpose(w_pt, (2, 3, 1, 0))[::-1, ::-1]
            w9 = w9.reshape(9, cout, emb_dim).astype(jnp.bfloat16)
            self.bands.append(dict(start=start, end=p, n=n,
                                   w_pt=w_pt, b=b, w9=w9,
                                   bias_col=b.reshape(cout, 1)))

    def __call__(self, x):
        # x: (B, emb_dim, F, T)  -- same NCHW convention as the torch module
        B, cin, F, T = x.shape
        assert cin == self.emb_dim
        outs = []
        for band in self.bands:
            start, end, n = band["start"], band["end"], band["n"]
            fb = end - start
            cout = 2 * n
            fbp = fb + 2

            tile_t = _choose_tile_t(T, cin, fb, cout)
            nt = _cdiv(T, tile_t)
            tp = tile_t + 2                     # padded time width per tile
            mout = fb * tp                      # flattened per-tile output cols
            mout_p = _round_up(mout, 128)       # lane-dense padded output
            mp_p = _round_up(2 * tp + 2 + mout_p, 128)   # input cols incl. halo

            xb = x[:, :, start:end, :].astype(jnp.bfloat16)
            # pad: 1 freq row each side; 1 time col left, 1 + tiling-tail right
            xp = jnp.pad(xb, ((0, 0), (0, 0), (1, 1),
                              (1, 1 + nt * tile_t - T)))
            if nt == 1:
                win = xp[:, None]                                 # (B,1,Cin,Fbp,Tp)
            else:
                # overlapping (halo=2 cols) time windows; <2% duplication
                win = jnp.stack(
                    [lax.slice_in_dim(xp, j * tile_t, j * tile_t + tp, axis=3)
                     for j in range(nt)], axis=1)                 # (B,NT,Cin,Fbp,Tp)
            x_flat = win.reshape(B, nt, cin, fbp * tp)
            x_flat = jnp.pad(
                x_flat, ((0, 0), (0, 0), (0, 0), (0, mp_p - fbp * tp)))

            out = _band_deconv_pallas(x_flat, band["w9"], band["bias_col"],
                                      tp, mout_p)                 # (B,NT,Cout,Mout_p)

            # un-flatten: valid columns are j = f*tp + t with t in [0, tile_t)
            y = out[..., :mout].reshape(B, nt, cout, fb, tp)[..., :tile_t]
            y = jnp.transpose(y, (0, 2, 3, 1, 4)).reshape(
                B, cout, fb, nt * tile_t)[..., :T]                # (B,Cout,Fb,T)
            # einops: 'B (C N) F T -> B C 1 (N F) T', C = 2
            y = y.reshape(B, 2, n, fb, T).reshape(B, 2, n * fb, T)[:, :, None]
            outs.append(y)
        return jnp.concatenate(outs, axis=-2)

    def reference(self, x):
        """Pure-JAX (XLA conv) reference with matching bf16 operand rounding."""
        B = x.shape[0]
        T = x.shape[-1]
        x_q = x.astype(jnp.bfloat16).astype(jnp.float32)
        outs = []
        for band in self.bands:
            start, end, n = band["start"], band["end"], band["n"]
            fb = end - start
            xb = x_q[:, :, start:end, :]
            w_oihw = jnp.transpose(band["w_pt"], (1, 0, 2, 3))[:, :, ::-1, ::-1]
            w_oihw = w_oihw.astype(jnp.bfloat16).astype(jnp.float32)
            y = lax.conv_general_dilated(
                xb, w_oihw, window_strides=(1, 1),
                padding=((1, 1), (1, 1)),
                dimension_numbers=('NCHW', 'OIHW', 'NCHW'))
            y = y + band["b"][None, :, None, None]
            y = y.reshape(B, 2, n, fb, T).reshape(B, 2, 1, n * fb, T)
            outs.append(y)
        return jnp.concatenate(outs, axis=-2)


if __name__ == "__main__":
    key = jax.random.PRNGKey(0)
    k_param, k_x = jax.random.split(key)

    # Small shapes consistent with the module's forward contract.
    emb_dim = 32
    input_n_freqs = 16
    split_points = {8: 1, 12: 2, 16: 4}   # input_n_freqs == max key
    B, T = 2, 8

    mod = SplitBandDeconvPallas(k_param, emb_dim=emb_dim,
                                input_n_freqs=input_n_freqs,
                                split_points=split_points)

    x = jax.random.normal(k_x, (B, emb_dim, input_n_freqs, T), jnp.float32)

    out = jax.block_until_ready(mod(x))
    ref = jax.block_until_ready(mod.reference(x))

    # output freq dim = sum_k N_k * Fband_k = 1*8 + 2*4 + 4*4 = 32
    assert out.shape == (B, 2, 1, 32, T), out.shape
    max_err = float(jnp.max(jnp.abs(out - ref)))
    assert max_err < 1e-2, f"max abs error {max_err}"

    print("KERNEL_OK")
</pallas_src>

<mosaic_0001>
module attributes {stable_mosaic.version = 11 : i64} {
  func.func @kernel(%arg0: i32, %arg1: i32, %arg2: memref<1x1x32x256xbf16, #tpu.memory_space<vmem>>, %arg3: memref<9x2x32xbf16, #tpu.memory_space<vmem>>, %arg4: memref<2x1xf32, #tpu.memory_space<vmem>>, %arg5: memref<1x1x2x128xf32, #tpu.memory_space<vmem>>) attributes {dimension_semantics = [#tpu.dimension_semantics<parallel>, #tpu.dimension_semantics<parallel>], iteration_bounds = array<i64: 2, 1>, scalar_prefetch = 0 : i64, scratch_operands = 0 : i64, tpu.core_type = #tpu.core_type<tc>, window_params = [{transform_indices = @transform_0, window_bounds = array<i64: 1, 1, 32, 256>}, {pipeline_mode = #tpu.pipeline_mode<synchronous>, transform_indices = @transform_1, window_bounds = array<i64: 9, 2, 32>}, {pipeline_mode = #tpu.pipeline_mode<synchronous>, transform_indices = @transform_2, window_bounds = array<i64: 2, 1>}, {transform_indices = @transform_3, window_bounds = array<i64: 1, 1, 2, 128>}]} {
    %c0 = arith.constant 0 : index
    %c0_0 = arith.constant 0 : index
    %c0_1 = arith.constant 0 : index
    %c0_2 = arith.constant 0 : index
    %0 = vector.load %arg2[%c0, %c0_0, %c0_1, %c0_2] : memref<1x1x32x256xbf16, #tpu.memory_space<vmem>>, vector<1x1x32x256xbf16>
    %1 = vector.shape_cast %0 : vector<1x1x32x256xbf16> to vector<32x256xbf16>
    %cst = arith.constant 0.000000e+00 : f32
    %2 = vector.broadcast %cst : f32 to vector<2x128xf32>
    %c0_3 = arith.constant 0 : index
    %c0_4 = arith.constant 0 : index
    %c0_5 = arith.constant 0 : index
    %3 = vector.load %arg3[%c0_3, %c0_4, %c0_5] : memref<9x2x32xbf16, #tpu.memory_space<vmem>>, vector<1x2x32xbf16>
    %4 = vector.shape_cast %3 : vector<1x2x32xbf16> to vector<2x32xbf16>
    %cst_6 = arith.constant dense<0.000000e+00> : vector<2x256xf32>
    %5 = tpu.matmul %4, %1, %cst_6 {dimension_numbers = #tpu.dot_dimension_numbers<[1], [0], [0], [1], [0, 0, 1, 1], [], []>} : vector<2x32xbf16>, vector<32x256xbf16>, vector<2x256xf32> -> vector<2x256xf32>
    %6 = vector.extract_strided_slice %5 {offsets = [0, 0], sizes = [2, 128], strides = [1, 1]} : vector<2x256xf32> to vector<2x128xf32>
    %7 = arith.addf %2, %6 : vector<2x128xf32>
    %c1 = arith.constant 1 : index
    %c0_7 = arith.constant 0 : index
    %c0_8 = arith.constant 0 : index
    %8 = vector.load %arg3[%c1, %c0_7, %c0_8] : memref<9x2x32xbf16, #tpu.memory_space<vmem>>, vector<1x2x32xbf16>
    %9 = vector.shape_cast %8 : vector<1x2x32xbf16> to vector<2x32xbf16>
    %cst_9 = arith.constant dense<0.000000e+00> : vector<2x256xf32>
    %10 = tpu.matmul %9, %1, %cst_9 {dimension_numbers = #tpu.dot_dimension_numbers<[1], [0], [0], [1], [0, 0, 1, 1], [], []>} : vector<2x32xbf16>, vector<32x256xbf16>, vector<2x256xf32> -> vector<2x256xf32>
    %11 = vector.extract_strided_slice %10 {offsets = [0, 1], sizes = [2, 128], strides = [1, 1]} : vector<2x256xf32> to vector<2x128xf32>
    %12 = arith.addf %7, %11 : vector<2x128xf32>
    %c2 = arith.constant 2 : index
    %c0_10 = arith.constant 0 : index
    %c0_11 = arith.constant 0 : index
    %13 = vector.load %arg3[%c2, %c0_10, %c0_11] : memref<9x2x32xbf16, #tpu.memory_space<vmem>>, vector<1x2x32xbf16>
    %14 = vector.shape_cast %13 : vector<1x2x32xbf16> to vector<2x32xbf16>
    %cst_12 = arith.constant dense<0.000000e+00> : vector<2x256xf32>
    %15 = tpu.matmul %14, %1, %cst_12 {dimension_numbers = #tpu.dot_dimension_numbers<[1], [0], [0], [1], [0, 0, 1, 1], [], []>} : vector<2x32xbf16>, vector<32x256xbf16>, vector<2x256xf32> -> vector<2x256xf32>
    %16 = vector.extract_strided_slice %15 {offsets = [0, 2], sizes = [2, 128], strides = [1, 1]} : vector<2x256xf32> to vector<2x128xf32>
    %17 = arith.addf %12, %16 : vector<2x128xf32>
    %c3 = arith.constant 3 : index
    %c0_13 = arith.constant 0 : index
    %c0_14 = arith.constant 0 : index
    %18 = vector.load %arg3[%c3, %c0_13, %c0_14] : memref<9x2x32xbf16, #tpu.memory_space<vmem>>, vector<1x2x32xbf16>
    %19 = vector.shape_cast %18 : vector<1x2x32xbf16> to vector<2x32xbf16>
    %cst_15 = arith.constant dense<0.000000e+00> : vector<2x256xf32>
    %20 = tpu.matmul %19, %1, %cst_15 {dimension_numbers = #tpu.dot_dimension_numbers<[1], [0], [0], [1], [0, 0, 1, 1], [], []>} : vector<2x32xbf16>, vector<32x256xbf16>, vector<2x256xf32> -> vector<2x256xf32>
    %21 = vector.extract_strided_slice %20 {offsets = [0, 10], sizes = [2, 128], strides = [1, 1]} : vector<2x256xf32> to vector<2x128xf32>
    %22 = arith.addf %17, %21 : vector<2x128xf32>
    %c4 = arith.constant 4 : index
    %c0_16 = arith.constant 0 : index
    %c0_17 = arith.constant 0 : index
    %23 = vector.load %arg3[%c4, %c0_16, %c0_17] : memref<9x2x32xbf16, #tpu.memory_space<vmem>>, vector<1x2x32xbf16>
    %24 = vector.shape_cast %23 : vector<1x2x32xbf16> to vector<2x32xbf16>
    %cst_18 = arith.constant dense<0.000000e+00> : vector<2x256xf32>
    %25 = tpu.matmul %24, %1, %cst_18 {dimension_numbers = #tpu.dot_dimension_numbers<[1], [0], [0], [1], [0, 0, 1, 1], [], []>} : vector<2x32xbf16>, vector<32x256xbf16>, vector<2x256xf32> -> vector<2x256xf32>
    %26 = vector.extract_strided_slice %25 {offsets = [0, 11], sizes = [2, 128], strides = [1, 1]} : vector<2x256xf32> to vector<2x128xf32>
    %27 = arith.addf %22, %26 : vector<2x128xf32>
    %c5 = arith.constant 5 : index
    %c0_19 = arith.constant 0 : index
    %c0_20 = arith.constant 0 : index
    %28 = vector.load %arg3[%c5, %c0_19, %c0_20] : memref<9x2x32xbf16, #tpu.memory_space<vmem>>, vector<1x2x32xbf16>
    %29 = vector.shape_cast %28 : vector<1x2x32xbf16> to vector<2x32xbf16>
    %cst_21 = arith.constant dense<0.000000e+00> : vector<2x256xf32>
    %30 = tpu.matmul %29, %1, %cst_21 {dimension_numbers = #tpu.dot_dimension_numbers<[1], [0], [0], [1], [0, 0, 1, 1], [], []>} : vector<2x32xbf16>, vector<32x256xbf16>, vector<2x256xf32> -> vector<2x256xf32>
    %31 = vector.extract_strided_slice %30 {offsets = [0, 12], sizes = [2, 128], strides = [1, 1]} : vector<2x256xf32> to vector<2x128xf32>
    %32 = arith.addf %27, %31 : vector<2x128xf32>
    %c6 = arith.constant 6 : index
    %c0_22 = arith.constant 0 : index
    %c0_23 = arith.constant 0 : index
    %33 = vector.load %arg3[%c6, %c0_22, %c0_23] : memref<9x2x32xbf16, #tpu.memory_space<vmem>>, vector<1x2x32xbf16>
    %34 = vector.shape_cast %33 : vector<1x2x32xbf16> to vector<2x32xbf16>
    %cst_24 = arith.constant dense<0.000000e+00> : vector<2x256xf32>
    %35 = tpu.matmul %34, %1, %cst_24 {dimension_numbers = #tpu.dot_dimension_numbers<[1], [0], [0], [1], [0, 0, 1, 1], [], []>} : vector<2x32xbf16>, vector<32x256xbf16>, vector<2x256xf32> -> vector<2x256xf32>
    %36 = vector.extract_strided_slice %35 {offsets = [0, 20], sizes = [2, 128], strides = [1, 1]} : vector<2x256xf32> to vector<2x128xf32>
    %37 = arith.addf %32, %36 : vector<2x128xf32>
    %c7 = arith.constant 7 : index
    %c0_25 = arith.constant 0 : index
    %c0_26 = arith.constant 0 : index
    %38 = vector.load %arg3[%c7, %c0_25, %c0_26] : memref<9x2x32xbf16, #tpu.memory_space<vmem>>, vector<1x2x32xbf16>
    %39 = vector.shape_cast %38 : vector<1x2x32xbf16> to vector<2x32xbf16>
    %cst_27 = arith.constant dense<0.000000e+00> : vector<2x256xf32>
    %40 = tpu.matmul %39, %1, %cst_27 {dimension_numbers = #tpu.dot_dimension_numbers<[1], [0], [0], [1], [0, 0, 1, 1], [], []>} : vector<2x32xbf16>, vector<32x256xbf16>, vector<2x256xf32> -> vector<2x256xf32>
    %41 = vector.extract_strided_slice %40 {offsets = [0, 21], sizes = [2, 128], strides = [1, 1]} : vector<2x256xf32> to vector<2x128xf32>
    %42 = arith.addf %37, %41 : vector<2x128xf32>
    %c8 = arith.constant 8 : index
    %c0_28 = arith.constant 0 : index
    %c0_29 = arith.constant 0 : index
    %43 = vector.load %arg3[%c8, %c0_28, %c0_29] : memref<9x2x32xbf16, #tpu.memory_space<vmem>>, vector<1x2x32xbf16>
    %44 = vector.shape_cast %43 : vector<1x2x32xbf16> to vector<2x32xbf16>
    %cst_30 = arith.constant dense<0.000000e+00> : vector<2x256xf32>
    %45 = tpu.matmul %44, %1, %cst_30 {dimension_numbers = #tpu.dot_dimension_numbers<[1], [0], [0], [1], [0, 0, 1, 1], [], []>} : vector<2x32xbf16>, vector<32x256xbf16>, vector<2x256xf32> -> vector<2x256xf32>
    %46 = vector.extract_strided_slice %45 {offsets = [0, 22], sizes = [2, 128], strides = [1, 1]} : vector<2x256xf32> to vector<2x128xf32>
    %47 = arith.addf %42, %46 : vector<2x128xf32>
    %c0_31 = arith.constant 0 : index
    %c0_32 = arith.constant 0 : index
    %48 = vector.load %arg4[%c0_31, %c0_32] : memref<2x1xf32, #tpu.memory_space<vmem>>, vector<2x1xf32>
    %49 = vector.broadcast %48 : vector<2x1xf32> to vector<2x128xf32>
    %50 = arith.addf %47, %49 : vector<2x128xf32>
    %c0_33 = arith.constant 0 : index
    %c0_34 = arith.constant 0 : index
    %c0_35 = arith.constant 0 : index
    %c0_36 = arith.constant 0 : index
    %51 = vector.load %arg5[%c0_33, %c0_34, %c0_35, %c0_36] : memref<1x1x2x128xf32, #tpu.memory_space<vmem>>, vector<1x1x2x128xf32>
    %52 = vector.shape_cast %51 : vector<1x1x2x128xf32> to vector<2x128xf32>
    %53 = vector.shape_cast %50 : vector<2x128xf32> to vector<1x1x2x128xf32>
    tpu.vector_store %arg5[%c0_33, %c0_34, %c0_35, %c0_36], %53 {strides = array<i32>} : memref<1x1x2x128xf32, #tpu.memory_space<vmem>>, vector<1x1x2x128xf32>,
    return
  }
  func.func @transform_0(%arg0: i32, %arg1: i32) -> (i32, i32, i32, i32) {
    %c0_i32 = arith.constant 0 : i32
    %c0_i32_0 = arith.constant 0 : i32
    %c0_i32_1 = arith.constant 0 : i32
    return %arg0, %arg1, %c0_i32, %c0_i32_0 : i32, i32, i32, i32
  }
  func.func @transform_1(%arg0: i32, %arg1: i32) -> (i32, i32, i32) {
    %c0_i32 = arith.constant 0 : i32
    %c0_i32_0 = arith.constant 0 : i32
    %c0_i32_1 = arith.constant 0 : i32
    %c0_i32_2 = arith.constant 0 : i32
    return %c0_i32, %c0_i32_0, %c0_i32_1 : i32, i32, i32
  }
  func.func @transform_2(%arg0: i32, %arg1: i32) -> (i32, i32) {
    %c0_i32 = arith.constant 0 : i32
    %c0_i32_0 = arith.constant 0 : i32
    %c0_i32_1 = arith.constant 0 : i32
    return %c0_i32, %c0_i32_0 : i32, i32
  }
  func.func @transform_3(%arg0: i32, %arg1: i32) -> (i32, i32, i32, i32) {
    %c0_i32 = arith.constant 0 : i32
    %c0_i32_0 = arith.constant 0 : i32
    %c0_i32_1 = arith.constant 0 : i32
    return %arg0, %arg1, %c0_i32, %c0_i32_0 : i32, i32, i32, i32
  }
}

</mosaic_0001>

<bundles_post_ra>
// kernel: tpu_custom_call.1
= control target key start
LH: loop header
LB: loop body
LE: loop exit
PB: predicated region body
PF: predicated region fallthrough
CT: control target
= control target key end

     0   :  { %8 = vsyncpa [#allocation3], 0  ;;  %s1348_s0 = inlined_call_operand.hbm [shape: bf16[2,1,32,256], index: 0, kind: input, shape index: {}]   ;;  %s1349_s1 = inlined_call_operand.hbm [shape: bf16[9,2,32], index: 1, kind: input, shape index: {}]   ;;  %s1350_s2 = inlined_call_operand.vmem [shape: f32[2,1], index: 2, kind: input, shape index: {}]   ;;  %s1351_s3 = inlined_call_operand.hbm [shape: f32[2,1,2,128], index: 3, kind: output, shape index: {}]  }
   0x1   :  { %10 = vsyncpa [#allocation3 + $0x1], 0 }
   0x2   :  { %11 = vsyncpa [#allocation6], 0 }
   0x3   :  { %12 = vsyncpa [#allocation4], 0 }
   0x4   :  { %14 = vsyncpa [#allocation4 + $0x1], 0  ;;  %s1155_s12 = smov 0   ;;  %s1157_s13 = smov 0  }
   0x5   :  { %s1159_s14 = smov 0   ;;  %s1161_s15 = smov 0  }
   0x6   :  { %s1163_s16 = smov 0   ;;  %s1165_s17 = smov 0  }
   0x7 LB: > { %s856_s18 = sadd.s32 4294967295, %s1117_s17   ;;  %s857_s19 = sadd.s32 4294967294, %s1117_s17   ;;  %s1117_s17 = sphi %s1165_s17, %s20_s17   ;;  %s1113_s16 = sphi %s1163_s16, %s1369_s16   ;;  %s1109_s15 = sphi %s1161_s15, %s1368_s15   ;;  %s1105_s14 = sphi %s1159_s14, %s1367_s14   ;;  %s1101_s13 = sphi %s1157_s13, %s1366_s13   ;;  %s1097_s12 = sphi %s1155_s12, %s1365_s12  }
   0x8   : > { %p54_p0 = scmp.ne.s32.totalorder %s1101_s13, %s1097_s12  ;;  %p1189_p1 = scmp.eq.s32.totalorder %s856_s18, 0 }
   0x9   : > { %p1193_p2 = scmp.eq.s32.totalorder %s856_s18, 1  ;;  %p128_p3 = scmp.eq.s32.totalorder %s857_s19, 1 }
   0xa   : > { %p1199_p4 = por %p1189_p1, %p54_p0  ;;  %p858_p5 = scmp.ge.s32.totalorder %s1117_s17, 1 }
   0xb   : > { %p1204_p6 = por %p128_p3, %p54_p0  ;;  %p135_p7 = scmp.lt.s32.totalorder %s1117_s17, 3 }
   0xc   : > { %s1355_s22 = scalar_select %p1199_p4, 1, 0 }
   0xd   : > { %s1356_s23 = scalar_select %p1204_p6, 1, 0 }
   0xe   : > { %p1209_p8 = pnand %p858_p5, %p135_p7  ;;  %s1119_s25 = smov [#allocation5]  }
   0xf   : > { %s147_s26 = sshll.u32 %s1119_s25, 4  ;;  %s32_s28 = sadd.s32 1, %s1113_s16  ;;  %s148_s26 = int_to_ptr.vmem [resolvable:$true] %s147_s26 }
  0x10   : > { %p894_p9 = pneg %p1209_p8  ;;  %s990_s29 = scalar_lea.vmem %s148_s26, 144 }
  0x11   : > { %p991_p13 = scmp.ne.s32.totalorder %s148_s26, %s990_s29  ;;  %s997_s30 = scalar_lea.vmem %s148_s26, 160 }
  0x12   : > { %p1218_p11 = pnand %p894_p9, %p1189_p1  ;;  %p998_p5 = scmp.lt.s32.totalorder %s148_s26, %s148_s26 }
  0x13   : > { %p999_p7 = scmp.lt.s32.totalorder %s997_s30, %s990_s29 }
  0x14   : > { %p981_p12 = pneg %p1218_p11 }
  0x15   : > { %p1000_p6 = por %p999_p7, %p998_p5 }
  0x16   : > { %p993_p0 = pnand %p991_p13, %p981_p12 }
  0x18   : > { %p994_p3 = pneg %p993_p0 }
  0x1a   : > { %p1001_p4 = pnand %p1000_p6, %p994_p3 }
  0x1c   : > { %1004 = shalt.err (!%p1001_p4)
}
  0x1d   : > { %s1120_s4 = smov 16   ;;  %s1121_s5 = smov 1  }
  0x1e   : > { %897 = dma.hbm_to_vmem [thread:$0]  (!%p1218_p11), %s1349_s1, 144, %s148_s26, [#allocation6], %s1120_s4, %s1120_s4, %s1121_s5  }
  0x1f   : > { %p34_p6 = scmp.ge.s32.totalorder %s32_s28, 2  ;;  %s41_s8 = sadd.s32 1, %s1105_s14 }
  0x20   : > { %p48_p4 = scmp.ne.s32.totalorder %s1105_s14, %s1101_s13  ;;  %p49_p9 = scmp.eq.s32.totalorder %s1117_s17, 0 }
  0x21   : > { %s1371_s28 = smov (%p34_p6, %s32_s28), 0  ;;  %p907_p0 = scmp.lt.s32.totalorder %s1117_s17, 2 }
  0x22   : > { %p1236_p12 = por %p49_p9, %p48_p4  ;;  %p1242_p13 = por %p1193_p2, %p48_p4 }
  0x23   : > { %s36_s11 = ssub.s32 %s1113_s16, %s1371_s28  ;;  %s164_s18 = sand.u32 1, %s1105_s14  }
  0x24   : > { %p39_p11 = scmp.eq.s32.totalorder %s36_s11, 0  ;;  %s861_s19 = sshll.u32 %s164_s18, 5 }
  0x25   : > { %s885_s26 = sshll.u32 %s1113_s16, 9  ;;  %s168_s4 = scalar_lea.vmem [#allocation2], %s861_s19 }
  0x26   : > { %s1251_s25 = scalar_select %p39_p11, %s1105_s14, %s41_s8  }
  0x27   : > { %s176_s30 = scalar_lea.hbm %s1348_s0, %s885_s26  ;;  %s177_s5 = sshll.u32 %s168_s4, 4  ;;  %s178_s5 = int_to_ptr.vmem [resolvable:$true] %s177_s5 }
  0x28   : > { %p1259_p2 = pnand %p907_p0, %p1236_p12  ;;  %s165_s6 = scalar_lea.sflag [#allocation3], %s164_s18 }
  0x29   : > { %s1018_s7 = scalar_lea.vmem %s178_s5, 512  ;;  %s1122_s8 = smov [#allocation2]  }
  0x2a   : > { %p1007_p3 = pneg %p1259_p2  ;;  %p1019_p5 = scmp.ne.s32.totalorder %s178_s5, %s1018_s7 }
  0x2b   : > { %s1023_s11 = sshll.u32 %s1122_s8, 4  ;;  %s1024_s11 = int_to_ptr.vmem [resolvable:$false] %s1023_s11 }
  0x2c   : > { %p1021_p7 = pnand %p1019_p5, %p1007_p3  ;;  %s1025_s26 = scalar_lea.vmem %s1024_s11, 1024 }
  0x2d   : > { %p1026_p4 = scmp.lt.s32.totalorder %s178_s5, %s1024_s11  ;;  %p1027_p9 = scmp.lt.s32.totalorder %s1025_s26, %s1018_s7 }
  0x2e   : > { %p1022_p6 = pneg %p1021_p7 }
  0x2f   : > { %p1028_p11 = por %p1027_p9, %p1026_p4 }
  0x31   : > { %p1029_p10 = pnand %p1028_p11, %p1022_p6 }
  0x33   : > { %1032 = shalt.err (!%p1029_p10)
}
  0x34   : > { %s1123_s9 = smov 128   ;;  %s1124_s19 = smov 8  }
  0x35   : > { %901 = dma.hbm_to_vmem [thread:$0]  (!%p1259_p2), %s176_s30, 512, %s178_s5, %s165_s6, %s1123_s9, %s1123_s9, %s1124_s19  }
  0x36   : > { %189 = sbr.rel (%p1209_p8) target bundleno = 438 (0x1b6), region = 32  ;;  %s1270_s18 = sand.u32 (!%p1209_p8), 1, %s1101_s13  }
  0x37   : > { %s865_s27 = sshll.u32 (!%p1209_p8), %s1270_s18, 5  ;;  %s192_s29 = scalar_lea.sflag (!%p1209_p8), [#allocation3], %s1270_s18 }
  0x38   : > { %s195_s4 = scalar_lea.vmem (!%p1209_p8), [#allocation2], %s865_s27  ;;  %p1362_p12 = scmp.ne.s32.totalorder (!%p1209_p8), %s1355_s22, 0 }
  0x3b   : > { %1084 = dma.done.wait (%p1362_p12), %s192_s29, 512  }
  0x3c   : > { %1086 = vsyncadd (%p1362_p12), %s192_s29, 4294966784 }
  0x3d   : > { %1088 = dma.done.wait (%p1189_p1), [#allocation6], 144  }
  0x3e   : > { %1090 = vsyncadd (%p1189_p1), [#allocation6], 4294967152  ;;  %v1125_v0 = vmov 0   ;;  %v973_v1 = vld [vmem:[%s195_s4 + $0x14] ss:$8 sps:$4 sm:$0xff]   ;;  %vm248_vm0 = vcmask 261120  }
  0x3f   : > { %284 = vmatprep.mubr.bf16.mxu0 %v1125_v0  ;;  %330 = vmatprep.mubr.bf16.mxu1 %v1125_v0  ;;  %v975_v2 = vld [vmem:[%s195_s4 + $0x10] ss:$8 sps:$4 sm:$0xff]   ;;  %v976_v3 = vld [vmem:[%s195_s4 + $0x4] ss:$8 sps:$4 sm:$0xff]   ;;  %v978_v4 = vld [vmem:[%s195_s4] ss:$8 sps:$4 sm:$0xff]  }
  0x40   : > { %972 = vset.pattern.permute.xlu0 %v1125_v0  ;;  %264 = vmatprep.subr.bf16.mxu0 %v973_v1  ;;  %v227_v5 = vld [vmem:[#allocation5] sm:$0x1]  ;;  %v294_v6 = vld [vmem:[#allocation5 + $0x1] sm:$0x1]  ;;  %v350_v7 = vld [vmem:[#allocation5 + $0x2] sm:$0x1] }
  0x41   : > { %310 = vmatprep.subr.bf16.mxu1 %v973_v1  ;;  %265 = vmatpush1.bf16.msra.mxu0 %v975_v2  ;;  %v406_v8 = vld [vmem:[#allocation5 + $0x3] sm:$0x1]  ;;  %v462_v9 = vld [vmem:[#allocation5 + $0x4] sm:$0x1]  ;;  %v518_v10 = vld [vmem:[#allocation5 + $0x5] sm:$0x1] }
  0x42   : > { %311 = vmatpush1.bf16.msra.mxu1 %v975_v2  ;;  %266 = vmatprep.subr.bf16.mxu0 %v976_v3  ;;  %v574_v11 = vld [vmem:[#allocation5 + $0x6] sm:$0x1]  ;;  %v630_v12 = vld [vmem:[#allocation5 + $0x7] sm:$0x1]  ;;  %v686_v13 = vld [vmem:[#allocation5 + $0x8] sm:$0x1] }
  0x43   : > { %312 = vmatprep.subr.bf16.mxu1 %v976_v3  ;;  %s1126_s20 = smov 127   ;;  %s1127_s22 = smov 126   ;;  %v741_v46 = vld [vmem:[%s1350_s2] sm:$0x3]  ;;  %vm345_vm1 = vcmask 1039360   ;;  %vm401_vm2 = vcmask 1031168  }
  0x44   : > { %s1128_s24 = smov 118   ;;  %s1129_s30 = smov 117   ;;  %vm457_vm3 = vcmask 965632   ;;  %vm513_vm4 = vcmask 957440   ;;  %vm569_vm5 = vcmask 949248   ;;  %vm625_vm6 = vcmask 883712  }
  0x45   : > { %267 = vmatpush1.bf16.msra.mxu0 %v978_v4  ;;  %s1130_s5 = smov 116   ;;  %s1131_s21 = smov 108   ;;  %vm681_vm7 = vcmask 875520   ;;  %vm737_vm8 = vcmask 867328  }
  0x46   : > { %313 = vmatpush1.bf16.msra.mxu1 %v978_v4  ;;  %366 = vmatprep.subr.bf16.mxu0 %v973_v1  ;;  %s1132_s6 = smov 107   ;;  %s1133_s11 = smov 106  }
  0x47   : > { %422 = vmatprep.subr.bf16.mxu1 %v973_v1  ;;  %s867_s26 = sshll.u32 %s1270_s18, 1  ;;  %s882_s9 = sshll.u32 %s1109_s15, 5 }
  0x48   : > { %872 = vmatmul.mubr.msk.bf16.vlgmr.msra.gmra.mxu0 %vm248_vm0, %v227_v5  ;;  %s221_s19 = scalar_lea.vmem [#allocation7], %s867_s26 }
  0x49   : > { %873 = vmatmul.mubr.msk.bf16.vlgmr.msra.gmra.mxu1 %vm248_vm0, %v294_v6  ;;  %367 = vmatpush1.bf16.msra.mxu0 %v975_v2  ;;  %s764_s27 = sshll.u32 %s221_s19, 4  ;;  %s765_s27 = int_to_ptr.vmem [resolvable:$true] %s764_s27 }
  0x4a   : > { %423 = vmatpush1.bf16.msra.mxu1 %v975_v2  ;;  %368 = vmatprep.subr.bf16.mxu0 %v976_v3 }
  0x4b   : > { %424 = vmatprep.subr.bf16.mxu1 %v976_v3  ;;  %386 = vmatprep.mubr.bf16.mxu0 %v1125_v0 }
  0x4c   : > { %442 = vmatprep.mubr.bf16.mxu1 %v1125_v0 }
  0x4d   : > { %369 = vmatpush1.bf16.msra.mxu0 %v978_v4 }
  0x4e   : > { %425 = vmatpush1.bf16.msra.mxu1 %v978_v4  ;;  %478 = vmatprep.subr.bf16.mxu0 %v973_v1 }
  0x4f   : > { %534 = vmatprep.subr.bf16.mxu1 %v973_v1 }
  0x50   : > { %874 = vmatmul.mubr.msk.bf16.vlgmr.msra.gmra.mxu0 %vm248_vm0, %v350_v7 }
  0x51   : > { %875 = vmatmul.mubr.msk.bf16.vlgmr.msra.gmra.mxu1 %vm248_vm0, %v406_v8  ;;  %479 = vmatpush1.bf16.msra.mxu0 %v975_v2 }
  0x52   : > { %535 = vmatpush1.bf16.msra.mxu1 %v975_v2  ;;  %480 = vmatprep.subr.bf16.mxu0 %v976_v3 }
  0x53   : > { %536 = vmatprep.subr.bf16.mxu1 %v976_v3  ;;  %498 = vmatprep.mubr.bf16.mxu0 %v1125_v0 }
  0x54   : > { %554 = vmatprep.mubr.bf16.mxu1 %v1125_v0 }
  0x55   : > { %481 = vmatpush1.bf16.msra.mxu0 %v978_v4 }
  0x56   : > { %537 = vmatpush1.bf16.msra.mxu1 %v978_v4  ;;  %590 = vmatprep.subr.bf16.mxu0 %v973_v1 }
  0x57   : > { %646 = vmatprep.subr.bf16.mxu1 %v973_v1 }
  0x58   : > { %876 = vmatmul.mubr.msk.bf16.vlgmr.msra.gmra.mxu0 %vm248_vm0, %v462_v9 }
  0x59   : > { %877 = vmatmul.mubr.msk.bf16.vlgmr.msra.gmra.mxu1 %vm248_vm0, %v518_v10  ;;  %591 = vmatpush1.bf16.msra.mxu0 %v975_v2 }
  0x5a   : > { %647 = vmatpush1.bf16.msra.mxu1 %v975_v2  ;;  %592 = vmatprep.subr.bf16.mxu0 %v976_v3 }
  0x5b   : > { %648 = vmatprep.subr.bf16.mxu1 %v976_v3  ;;  %610 = vmatprep.mubr.bf16.mxu0 %v1125_v0 }
  0x5c   : > { %666 = vmatprep.mubr.bf16.mxu1 %v1125_v0 }
  0x5d   : > { %593 = vmatpush1.bf16.msra.mxu0 %v978_v4 }
  0x5e   : > { %649 = vmatpush1.bf16.msra.mxu1 %v978_v4  ;;  %702 = vmatprep.subr.bf16.mxu0 %v973_v1 }
  0x60   : > { %878 = vmatmul.mubr.msk.bf16.vlgmr.msra.gmra.mxu0 %vm248_vm0, %v574_v11 }
  0x61   : > { %879 = vmatmul.mubr.msk.bf16.vlgmr.msra.gmra.mxu1 %vm248_vm0, %v630_v12  ;;  %703 = vmatpush1.bf16.msra.mxu0 %v975_v2 }
  0x62   : > { %722 = vmatprep.mubr.bf16.mxu0 %v1125_v0  ;;  %704 = vmatprep.subr.bf16.mxu0 %v976_v3 }
  0x65   : > { %705 = vmatpush1.bf16.msra.mxu0 %v978_v4 }
  0x68   : > { %880 = vmatmul.mubr.msk.bf16.vlgmr.msra.gmra.mxu0 %vm248_vm0, %v686_v13 }
 0x108   : > { %v1301_v14 = vpop.f32.mrf.mxu0 }
 0x109   : > { %v332_v15 = vpop.f32.mrf.mxu1 }
 0x10a   : > { %341 = vrot.lane.b32.xlu0 %v332_v15, %s1126_s20  ;;  %v288_v16 = vpop.f32.mrf.mxu0 }
 0x10b   : > { %v334_v17 = vpop.f32.mrf.mxu1 }
 0x10c   : > { %v289_v18 = vpop.f32.mrf.mxu0 }
 0x10d   : > { %v336_v19 = vpop.f32.mrf.mxu1 }
 0x10e   : > { %343 = vrot.lane.b32.xlu0 %v334_v17, %s1126_s20  ;;  %v290_v20 = vpop.f32.mrf.mxu0  ;;  %s762_s20 = scalar_lea.hbm %s1351_s3, %s882_s9 }
 0x10f   : > { %v337_v21 = vpop.f32.mrf.mxu1 }
 0x110   : > { %v388_v22 = vpop.f32.mrf.mxu0 }
 0x111   : > { %v444_v23 = vpop.f32.mrf.mxu1  ;;  %397 = vrot.lane.b32.xlu1 %v388_v22, %s1127_s22 }
 0x112   : > { %453 = vrot.lane.b32.xlu0 %v444_v23, %s1128_s24  ;;  %v390_v24 = vpop.f32.mrf.mxu0 }
 0x113   : > { %v446_v25 = vpop.f32.mrf.mxu1 }
 0x114   : > { %v392_v26 = vpop.f32.mrf.mxu0 }
 0x115   : > { %v448_v27 = vpop.f32.mrf.mxu1  ;;  %399 = vrot.lane.b32.xlu1 %v390_v24, %s1127_s22  ;;  %s750_s22 = scalar_lea.sflag [#allocation4], %s1270_s18 }
 0x116   : > { %v393_v28 = vpop.f32.mrf.mxu0 }
 0x117   : > { %v449_v29 = vpop.f32.mrf.mxu1 }
 0x118   : > { %v500_v30 = vpop.f32.mrf.mxu0 }
 0x119   : > { %v556_v31 = vpop.f32.mrf.mxu1  ;;  %455 = vrot.lane.b32.xlu1 %v446_v25, %s1128_s24  ;;  %509 = vrot.lane.b32.xlu0 %v500_v30, %s1129_s30  ;;  %s1033_s24 = scalar_lea.vmem %s765_s27, 32 }
 0x11a   : > { %v502_v32 = vpop.f32.mrf.mxu0  ;;  %p1034_p1 = scmp.ne.s32.totalorder %s765_s27, %s1033_s24 }
 0x11b   : > { %v558_v33 = vpop.f32.mrf.mxu1 }
 0x11c   : > { %v504_v34 = vpop.f32.mrf.mxu0  ;;  %p1035_p8 = pnand %p1034_p1, %p1242_p13 }
 0x11d   : > { %v560_v35 = vpop.f32.mrf.mxu1  ;;  %511 = vrot.lane.b32.xlu1 %v502_v32, %s1129_s30  ;;  %565 = vrot.lane.b32.xlu0 %v556_v31, %s1130_s5  ;;  %s1134_s30 = smov [#allocation7]  }
 0x11e   : > { %v505_v36 = vpop.f32.mrf.mxu0  ;;  %p1036_p10 = pneg %p1035_p8 }
 0x11f   : > { %v561_v37 = vpop.f32.mrf.mxu1 }
 0x120   : > { %v612_v38 = vpop.f32.mrf.mxu0 }
 0x121   : > { %v668_v39 = vpop.f32.mrf.mxu1  ;;  %567 = vrot.lane.b32.xlu1 %v558_v33, %s1130_s5  ;;  %621 = vrot.lane.b32.xlu0 %v612_v38, %s1131_s21  ;;  %s1037_s5 = sshll.u32 %s1134_s30, 4  ;;  %s1038_s5 = int_to_ptr.vmem [resolvable:$false] %s1037_s5 }
 0x122   : > { %v614_v40 = vpop.f32.mrf.mxu0  ;;  %s1039_s15 = scalar_lea.vmem %s1038_s5, 64  ;;  %p1040_p0 = scmp.lt.s32.totalorder %s765_s27, %s1038_s5 }
 0x123   : > { %v670_v41 = vpop.f32.mrf.mxu1  ;;  %p1041_p2 = scmp.lt.s32.totalorder %s1039_s15, %s1033_s24 }
 0x124   : > { %v616_v42 = vpop.f32.mrf.mxu0 }
 0x125   : > { %v672_v43 = vpop.f32.mrf.mxu1  ;;  %623 = vrot.lane.b32.xlu1 %v614_v40, %s1131_s21  ;;  %677 = vrot.lane.b32.xlu0 %v668_v39, %s1132_s6  ;;  %p1042_p3 = por %p1041_p2, %p1040_p0 }
 0x126   : > { %v617_v44 = vpop.f32.mrf.mxu0 }
 0x127   : > { %v673_v45 = vpop.f32.mrf.mxu1  ;;  %p1043_p5 = pnand %p1042_p3, %p1036_p10 }
 0x128   : > { %v724_v47 = vpop.f32.mrf.mxu0 }
 0x129   : > { %679 = vrot.lane.b32.xlu1 %v670_v41, %s1132_s6  ;;  %744 = vperm.xlu0 %972, %v741_v46  }
 0x12a   : > { %v726_v48 = vpop.f32.mrf.mxu0 }
 0x12c   : > { %v728_v49 = vpop.f32.mrf.mxu0 }
 0x12d   : > { %733 = vrot.lane.b32.xlu1 %v724_v47, %s1133_s11 }
 0x12e   : > { %v729_v50 = vpop.f32.mrf.mxu0 }
 0x131   : > { %735 = vrot.lane.b32.xlu1 %v726_v48, %s1133_s11 }
 0x17c   : > { %v342_v51 = vpop.permute.xlu0 %341 }
 0x180   : > { %v344_v52 = vpop.permute.xlu0 %343 }
 0x181   : > { %v346_v61 = vsel %vm345_vm1, %v342_v51, %v344_v52 }
 0x182   : > { %v348_v63 = vadd.f32 %v346_v61, %v1301_v14 }
 0x183   : > { %v398_v53 = vpop.permute.xlu1 %397 }
 0x184   : > { %v454_v55 = vpop.permute.xlu0 %453 }
 0x187   : > { %v400_v54 = vpop.permute.xlu1 %399 }
 0x188   : > { %v402_v62 = vsel %vm401_vm2, %v398_v53, %v400_v54 }
 0x189   : > { %v404_v2 = vadd.f32 %v402_v62, %v348_v63 }
 0x18b   : > { %v456_v56 = vpop.permute.xlu1 %455  ;;  %v510_v57 = vpop.permute.xlu0 %509 }
 0x18c   : > { %v458_v1 = vsel %vm457_vm3, %v454_v55, %v456_v56 }
 0x18d   : > { %v460_v5 = vadd.f32 %v458_v1, %v404_v2 }
 0x18f   : > { %v512_v58 = vpop.permute.xlu1 %511  ;;  %v566_v59 = vpop.permute.xlu0 %565 }
 0x190   : > { %v514_v4 = vsel %vm513_vm4, %v510_v57, %v512_v58 }
 0x191   : > { %v516_v8 = vadd.f32 %v514_v4, %v460_v5 }
 0x193   : > { %v568_v60 = vpop.permute.xlu1 %567  ;;  %v622_v3 = vpop.permute.xlu0 %621 }
 0x194   : > { %v570_v7 = vsel %vm569_vm5, %v566_v59, %v568_v60 }
 0x195   : > { %v572_v10 = vadd.f32 %v570_v7, %v516_v8 }
 0x197   : > { %v624_v0 = vpop.permute.xlu1 %623  ;;  %v678_v11 = vpop.permute.xlu0 %677 }
 0x198   : > { %v626_v9 = vsel %vm625_vm6, %v622_v3, %v624_v0 }
 0x199   : > { %v628_v14 = vadd.f32 %v626_v9, %v572_v10 }
 0x19b   : > { %v680_v6 = vpop.permute.xlu1 %679 }
 0x19c   : > { %v682_v13 = vsel %vm681_vm7, %v678_v11, %v680_v6 }
 0x19d   : > { %v684_v15 = vadd.f32 %v682_v13, %v628_v14 }
 0x19f   : > { %v734_v12 = vpop.permute.xlu1 %733 }
 0x1a3   : > { %v736_v16 = vpop.permute.xlu1 %735 }
 0x1a4   : > { %v738_v17 = vsel %vm737_vm8, %v734_v12, %v736_v16  ;;  %v745_v18 = vpop.permute.xlu0 %744 }
 0x1a5   : > { %v740_v19 = vadd.f32 %v738_v17, %v684_v15 }
 0x1a7   : > { %v747_v20 = vadd.f32 %v745_v18, %v740_v19 }
 0x1a9   : > { %748 = vst [vmem:[%s221_s19] sm:$0x3] %v747_v20 }
 0x1aa   : > { %1046 = shalt.err (!%p1043_p5)
}
 0x1ab   : > { %s1047_s21 = scalar_lea.hbm %s762_s20, 32  ;;  %s1051_s7 = scalar_lea.hbm %s1351_s3, 64 }
 0x1ac   : > { %p1048_p7 = scmp.ne.s32.totalorder %s762_s20, %s1047_s21  ;;  %p1052_p9 = scmp.lt.s32.totalorder %s762_s20, %s1351_s3 }
 0x1ad   : > { %p1053_p11 = scmp.lt.s32.totalorder %s1051_s7, %s1047_s21 }
 0x1ae   : > { %p1049_p6 = pnand %p1048_p7, %p1242_p13 }
 0x1af   : > { %p1054_p12 = por %p1053_p11, %p1052_p9 }
 0x1b0   : > { %p1050_p4 = pneg %p1049_p6 }
 0x1b2   : > { %p1055_p1 = pnand %p1054_p12, %p1050_p4 }
 0x1b4   : > { %1058 = shalt.err (!%p1055_p1)
}
 0x1b5   : > { %892 = dma.vmem_to_hbm [thread:$0]  (%p1242_p13), %s765_s27, 32, %s762_s20, %s750_s22  }
 0x1b6 PF: > { %s776_s26 = sand.u32 1, %s1097_s12   ;;  %p1363_p8 = scmp.ne.s32.totalorder %s1356_s23, 0 }
 0x1b7   : > { %p1364_p10 = scmp.ge.s32.totalorder %s1117_s17, 2  ;;  %s777_s9 = scalar_lea.sflag [#allocation4], %s776_s26 }
 0x1b9   : > { %p903_p0 = pnand %p1364_p10, %p1363_p8 }
 0x1bb   : > { %p904_p2 = pneg %p903_p0 }
 0x1bd   : > { %1092 = dma.done.wait (%p904_p2), %s777_s9, 32  }
 0x1be   : > { %1094 = vsyncadd (%p904_p2), %s777_s9, 4294967264  ;;  %s20_s17 = sadd.s32 1, %s1117_s17   ;;  %s1365_s12 = smov %s1101_s13 }
 0x1bf   : > { %p17_p3 = scmp.ge.s32.totalorder %s20_s17, 4   ;;  %s1366_s13 = smov %s1105_s14 }
 0x1c0   : > { %s1367_s14 = smov %s1251_s25  ;;  %s1368_s15 = smov %s1113_s16 }
 0x1c1   : > { %s1369_s16 = smov %s1371_s28  ;;  %19 = sbr.rel (!%p17_p3) target bundleno = 7 (0x7), region = 89 }
 0x1c6   :  { %782 = vsyncpa [#allocation3], 1 }
 0x1c7   :  { %784 = vsyncpa [#allocation3 + $0x1], 1 }
 0x1c8   :  { %785 = vsyncpa [#allocation6], 1 }
 0x1c9   :  { %786 = vsyncpa [#allocation4], 1 }
 0x1ca   :  { %788 = vsyncpa [#allocation4 + $0x1], 1 }

</bundles_post_ra>
